<compile_context>
chip_gen: v7x
topology: tpu7x:2x2x1
jax: 0.10.0
libtpu: 0.0.40
codegen_flags: <defaults>
</compile_context>

<pallas_src>
import jax
import jax.numpy as jnp
from jax import lax
from jax.experimental import pallas as pl
from jax.experimental.pallas import tpu as pltpu


# ----------------------------- Pallas kernels ------------------------------ #

def conv_relu_pool_kernel(p_ref, wc_ref, bc_ref, o_ref):
    # p_ref : (1, 1, N, TM, K9)  bf16 im2col rows, quadrant-major within tile
    # wc_ref: (1, K9, Cout)      bf16 conv weight (resident across tiles)
    # bc_ref: (1, 1, Cout)       f32  conv bias
    # o_ref : (1, 1, N, TMP, Cout) bf16 pooled feature band (TMP = TM // 4)
    _, _, n, tm, k9 = p_ref.shape
    cout = wc_ref.shape[-1]
    tmp = tm // 4

    x = p_ref[0, 0].reshape(n * tm, k9)                         # leading-dim collapse
    y = jnp.dot(x, wc_ref[0], preferred_element_type=jnp.float32)
    y = jnp.maximum(y + bc_ref[0], 0.0)                         # conv + bias, ReLU (f32)
    y = y.reshape(n, tm, cout)                                  # lane dim unchanged

    # 2x2 max pool == max over the 4 quadrant row-blocks of this tile.
    m = y[:, 0:tmp, :]
    for q in range(1, 4):
        m = jnp.maximum(m, y[:, q * tmp:(q + 1) * tmp, :])
    # TODO(synk): store is Cout(=16)-lane wide; a lane-dense store needs an
    # in-kernel (N,TMP,Cout)->(N,TMP*Cout) lane-merge relayout (or FC fusion).
    o_ref[0, 0] = m.astype(o_ref.dtype)


def fc_kernel(f_ref, w_ref, b_ref, o_ref, acc_ref):
    # Grid = (branch, F_tile); F_tile is the reduction axis (last, "arbitrary").
    # f_ref: (1, N, TF) bf16   w_ref: (1, TF, Dout) bf16   b_ref: (1, 1, Dout) f32
    # o_ref: (N, Dout) f32 -- lane-dense half of the (N, 2*Dout) concat.
    # acc_ref: (N, Dout) f32 VMEM scratch accumulator.
    k = pl.program_id(1)

    @pl.when(k == 0)
    def _():
        acc_ref[...] = jnp.zeros_like(acc_ref)

    acc_ref[...] += jnp.dot(f_ref[0], w_ref[0],
                            preferred_element_type=jnp.float32)

    @pl.when(k == pl.num_programs(1) - 1)
    def _():
        o_ref[...] = (acc_ref[...] + b_ref[0]).astype(o_ref.dtype)


# ------------------------------ tiling helpers ------------------------------ #

def _pick_tile(total, cap, quantum):
    """Largest multiple of `quantum` that divides `total` and is <= cap."""
    assert total % quantum == 0, (total, quantum)
    best = quantum
    for d in range(quantum, min(total, cap) + 1, quantum):
        if total % d == 0:
            best = d
    return best


def _vmem_limit(est_bytes):
    # Keep the compiler default for small problems (known-good path); request
    # explicitly with margin once streams get big, capped v7x-safely (64 MiB).
    if est_bytes <= 8 * 1024 * 1024:
        return None
    return int(min(max(2 * est_bytes, 32 * 1024 * 1024), 48 * 1024 * 1024))


# ------------------------------ host-side glue ------------------------------ #

def _im2col_qmajor(x_nchw, k=3, pool=2):
    """Gather-free im2col for a 'same'-padded kxk conv.

    Returns (N, pool*pool, Np, k*k*Cin): index [n, q, p, tap] with
    q = pool*qi + qj (pool quadrant), p = ph*Wp + pw (pooled position),
    tap = (dh*k + dw)*Cin + ci.  Built from static strided slices + concats.
    TODO(synk): at the real 512x512 config build these patches in-kernel from
    a haloed image row-band (manual DMA) to avoid the ~9x HBM inflation.
    """
    n, cin, h, w = x_nchw.shape
    hp, wp = h // pool, w // pool
    xh = jnp.transpose(x_nchw, (0, 2, 3, 1))                       # NHWC
    # TODO(synk): 'same' padding below assumes k == 3.
    xp = jnp.pad(xh, ((0, 0), (1, 1), (1, 1), (0, 0)))
    quads = []
    for qi in range(pool):
        for qj in range(pool):
            taps = [xp[:,
                       qi + dh: qi + dh + pool * hp: pool,
                       qj + dw: qj + dw + pool * wp: pool, :]
                    for dh in range(k) for dw in range(k)]
            q = jnp.concatenate(taps, axis=-1)                     # (N,Hp,Wp,k*k*Cin)
            quads.append(q.reshape(n, 1, hp * wp, k * k * cin))
    return jnp.concatenate(quads, axis=1)                          # (N,4,Np,K9)


def _tile_rows(pat, t_tiles, tmp):
    """(N, 4, Np, K9) -> (T, N, TM, K9), row_local = q*TMP + p_local."""
    n, four, npx, k9 = pat.shape
    p5 = pat.reshape(n, four, t_tiles, tmp, k9)
    p5 = jnp.transpose(p5, (2, 0, 1, 3, 4))                        # (T,N,4,TMP,K9)
    return p5.reshape(t_tiles, n, four * tmp, k9)


def conv_relu_pool(patches, wc, bc, *, tmp):
    nb, t_tiles, n, tm, k9 = patches.shape
    cout = wc.shape[-1]
    lane = 128
    est = (2 * n * tm * lane * 2        # patch blocks (lanes padded), 2 buffers
           + 2 * n * tmp * lane * 2     # pooled blocks, 2 buffers
           + n * tm * lane * 4          # f32 conv accumulator
           + 4 * k9 * lane * 4)         # weights / bias, generous
    return pl.pallas_call(
        conv_relu_pool_kernel,
        out_shape=jax.ShapeDtypeStruct((nb, t_tiles, n, tmp, cout), jnp.bfloat16),
        grid_spec=pltpu.PrefetchScalarGridSpec(
            num_scalar_prefetch=0,
            grid=(nb, t_tiles),
            in_specs=[
                pl.BlockSpec((1, 1, n, tm, k9), lambda b, t: (b, t, 0, 0, 0)),
                pl.BlockSpec((1, k9, cout), lambda b, t: (b, 0, 0)),   # resident over t
                pl.BlockSpec((1, 1, cout), lambda b, t: (b, 0, 0)),
            ],
            out_specs=pl.BlockSpec((1, 1, n, tmp, cout),
                                   lambda b, t: (b, t, 0, 0, 0)),
        ),
        compiler_params=pltpu.CompilerParams(
            dimension_semantics=("parallel", "parallel"),
            vmem_limit_bytes=_vmem_limit(est),
        ),
    )(patches, wc, bc)                                             # (2,T,N,TMP,Cout)


def fc_concat(feats, wf, bf, *, tf):
    nb, n, f = feats.shape
    dout = wf.shape[-1]
    kt = f // tf
    n_pad = max(n, 8)
    est = (2 * tf * dout * 2            # FC weight tiles, 2 buffers (dominant)
           + 2 * n_pad * tf * 2         # feats tiles
           + 4 * n_pad * dout * 4)      # acc + out + bias
    return pl.pallas_call(
        fc_kernel,
        out_shape=jax.ShapeDtypeStruct((n, nb * dout), jnp.float32),
        grid_spec=pltpu.PrefetchScalarGridSpec(
            num_scalar_prefetch=0,
            grid=(nb, kt),                                         # reduction axis last
            in_specs=[
                pl.BlockSpec((1, n, tf), lambda b, k: (b, 0, k)),
                pl.BlockSpec((1, tf, dout), lambda b, k: (b, k, 0)),
                pl.BlockSpec((1, 1, dout), lambda b, k: (b, 0, 0)),
            ],
            out_specs=pl.BlockSpec((n, dout), lambda b, k: (0, b)),  # lane-dense 128
            scratch_shapes=[pltpu.VMEM((n, dout), jnp.float32)],
        ),
        compiler_params=pltpu.CompilerParams(
            dimension_semantics=("parallel", "arbitrary"),
            vmem_limit_bytes=_vmem_limit(est),
        ),
    )(feats, wf, bf)                                               # (N, 2*Dout)


def cnn_encoder_forward(x1, x2, params, *, patch_rows_cap=4096, fc_tile_cap=8192):
    n, cin, h, w = x1.shape
    cout, _, kh, kw = params["w_conv1"].shape
    hp, wp = h // 2, w // 2
    npx = hp * wp
    k9 = kh * kw * cin
    f = npx * cout
    dout = params["w_fc1"].shape[0]

    # ---- conv-stage spatial tiling (TM rows per sample per step) ----
    m_rows = 4 * npx
    tm = _pick_tile(m_rows, patch_rows_cap, 32)   # mult of 32 -> TMP mult of 8
    t_tiles = m_rows // tm
    tmp = tm // 4

    # ---- host-side im2col (bf16); see TODO(synk) in _im2col_qmajor ----
    pats = [_tile_rows(_im2col_qmajor(x, k=kh, pool=2), t_tiles, tmp)
            for x in (x1, x2)]
    patches = jnp.stack(pats, axis=0).astype(jnp.bfloat16)        # (2,T,N,TM,K9)

    # Conv weight rows ordered (dh, dw) tap-major, channel-minor (matches taps).
    wc = jnp.stack([params["w_conv1"], params["w_conv2"]], axis=0)
    wc = jnp.transpose(wc, (0, 3, 4, 2, 1)).reshape(2, k9, cout).astype(jnp.bfloat16)
    bc = jnp.stack([params["b_conv1"], params["b_conv2"]],
                   axis=0).reshape(2, 1, cout).astype(jnp.float32)

    pooled = conv_relu_pool(patches, wc, bc, tmp=tmp)             # (2,T,N,TMP,Cout)

    # Flatten to (2, N, F); feature index = p_global*Cout + c (one XLA relayout).
    feats = jnp.transpose(pooled, (0, 2, 1, 3, 4)).reshape(2, n, f)

    # PyTorch flattens NCHW as (c, ph, pw); reorder the FC weight to our
    # (p_global, c) order instead of touching the activations.
    def reorder(w_fc):
        return jnp.transpose(
            w_fc.reshape(dout, cout, hp, wp), (2, 3, 1, 0)).reshape(f, dout)

    wf = jnp.stack([reorder(params["w_fc1"]), reorder(params["w_fc2"])],
                   axis=0).astype(jnp.bfloat16)
    bf = jnp.stack([params["b_fc1"], params["b_fc2"]],
                   axis=0).reshape(2, 1, dout).astype(jnp.float32)

    tf = _pick_tile(f, fc_tile_cap, 128)                          # 2 MiB bf16 tiles max
    return fc_concat(feats, wf, bf, tf=tf)                        # (N, 2*Dout)


# --------------------------- Pure-JAX reference ----------------------------- #

def reference_forward(x1, x2, params):
    def branch(x, wc, bc, wf, bf):
        y = lax.conv_general_dilated(
            x, wc, window_strides=(1, 1), padding="SAME",
            dimension_numbers=("NCHW", "OIHW", "NCHW"),
            precision=lax.Precision.HIGHEST)
        y = jax.nn.relu(y + bc.reshape(1, -1, 1, 1))
        y = lax.reduce_window(y, -jnp.inf, lax.max,
                              (1, 1, 2, 2), (1, 1, 2, 2), "VALID")
        y = y.reshape(y.shape[0], -1)
        return jnp.dot(y, wf.T, precision=lax.Precision.HIGHEST) + bf

    y1 = branch(x1, params["w_conv1"], params["b_conv1"],
                params["w_fc1"], params["b_fc1"])
    y2 = branch(x2, params["w_conv2"], params["b_conv2"],
                params["w_fc2"], params["b_fc2"])
    return jnp.concatenate([y1, y2], axis=1)


# --------------------------------- main ------------------------------------ #

if __name__ == "__main__":
    N, CIN, H, W = 2, 3, 16, 16
    COUT, KH, KW = 16, 3, 3
    HP, WP = H // 2, W // 2
    F = HP * WP * COUT          # 1024 at these small shapes
    DOUT = 128

    key = jax.random.PRNGKey(0)
    ks = jax.random.split(key, 10)
    params = {
        "w_conv1": 0.05 * jax.random.normal(ks[0], (COUT, CIN, KH, KW), jnp.float32),
        "b_conv1": 0.05 * jax.random.normal(ks[1], (COUT,), jnp.float32),
        "w_fc1":   0.05 * jax.random.normal(ks[2], (DOUT, F), jnp.float32),
        "b_fc1":   0.05 * jax.random.normal(ks[3], (DOUT,), jnp.float32),
        "w_conv2": 0.05 * jax.random.normal(ks[4], (COUT, CIN, KH, KW), jnp.float32),
        "b_conv2": 0.05 * jax.random.normal(ks[5], (COUT,), jnp.float32),
        "w_fc2":   0.05 * jax.random.normal(ks[6], (DOUT, F), jnp.float32),
        "b_fc2":   0.05 * jax.random.normal(ks[7], (DOUT,), jnp.float32),
    }
    x1 = jax.random.normal(ks[8], (N, CIN, H, W), jnp.float32)
    x2 = jax.random.normal(ks[9], (N, CIN, H, W), jnp.float32)

    out = jax.block_until_ready(cnn_encoder_forward(x1, x2, params))
    ref = jax.block_until_ready(reference_forward(x1, x2, params))

    assert out.shape == (N, 2 * DOUT), out.shape
    err = float(jnp.max(jnp.abs(out - ref)))
    scale = float(jnp.max(jnp.abs(ref))) + 1.0
    assert err <= 1e-2 * scale, f"mismatch vs reference: max_abs_err={err}"
    print("KERNEL_OK")
</pallas_src>

<mosaic_0001>
module attributes {stable_mosaic.version = 11 : i64} {
  func.func @conv_relu_pool_kernel(%arg0: i32, %arg1: i32, %arg2: memref<1x1x2x256x27xbf16, #tpu.memory_space<vmem>>, %arg3: memref<1x27x16xbf16, #tpu.memory_space<vmem>>, %arg4: memref<1x1x16xf32, #tpu.memory_space<vmem>>, %arg5: memref<1x1x2x64x16xbf16, #tpu.memory_space<vmem>>) attributes {dimension_semantics = [#tpu.dimension_semantics<parallel>, #tpu.dimension_semantics<parallel>], iteration_bounds = array<i64: 2, 1>, scalar_prefetch = 0 : i64, scratch_operands = 0 : i64, tpu.core_type = #tpu.core_type<tc>, window_params = [{transform_indices = @transform_0, window_bounds = array<i64: 1, 1, 2, 256, 27>}, {transform_indices = @transform_1, window_bounds = array<i64: 1, 27, 16>}, {transform_indices = @transform_2, window_bounds = array<i64: 1, 1, 16>}, {transform_indices = @transform_3, window_bounds = array<i64: 1, 1, 2, 64, 16>}]} {
    %c0 = arith.constant 0 : index
    %c0_0 = arith.constant 0 : index
    %c0_1 = arith.constant 0 : index
    %c0_2 = arith.constant 0 : index
    %c0_3 = arith.constant 0 : index
    %0 = vector.load %arg2[%c0, %c0_0, %c0_1, %c0_2, %c0_3] : memref<1x1x2x256x27xbf16, #tpu.memory_space<vmem>>, vector<1x1x2x256x27xbf16>
    %1 = vector.shape_cast %0 : vector<1x1x2x256x27xbf16> to vector<2x256x27xbf16>
    %2 = vector.shape_cast %1 : vector<2x256x27xbf16> to vector<512x27xbf16>
    %c0_4 = arith.constant 0 : index
    %c0_5 = arith.constant 0 : index
    %c0_6 = arith.constant 0 : index
    %3 = vector.load %arg3[%c0_4, %c0_5, %c0_6] : memref<1x27x16xbf16, #tpu.memory_space<vmem>>, vector<1x27x16xbf16>
    %4 = vector.shape_cast %3 : vector<1x27x16xbf16> to vector<27x16xbf16>
    %cst = arith.constant dense<0.000000e+00> : vector<512x16xf32>
    %5 = tpu.matmul %2, %4, %cst {dimension_numbers = #tpu.dot_dimension_numbers<[1], [0], [0], [1], [0, 0, 1, 1], [], []>} : vector<512x27xbf16>, vector<27x16xbf16>, vector<512x16xf32> -> vector<512x16xf32>
    %c0_7 = arith.constant 0 : index
    %c0_8 = arith.constant 0 : index
    %c0_9 = arith.constant 0 : index
    %6 = vector.load %arg4[%c0_7, %c0_8, %c0_9] : memref<1x1x16xf32, #tpu.memory_space<vmem>>, vector<1x1x16xf32>
    %7 = vector.shape_cast %6 : vector<1x1x16xf32> to vector<1x16xf32>
    %8 = vector.broadcast %7 : vector<1x16xf32> to vector<512x16xf32>
    %9 = arith.addf %5, %8 : vector<512x16xf32>
    %cst_10 = arith.constant 0.000000e+00 : f32
    %10 = vector.broadcast %cst_10 : f32 to vector<512x16xf32>
    %11 = arith.maximumf %9, %10 : vector<512x16xf32>
    %12 = vector.shape_cast %11 : vector<512x16xf32> to vector<2x256x16xf32>
    %13 = vector.extract_strided_slice %12 {offsets = [0, 0, 0], sizes = [2, 64, 16], strides = [1, 1, 1]} : vector<2x256x16xf32> to vector<2x64x16xf32>
    %14 = vector.extract_strided_slice %12 {offsets = [0, 64, 0], sizes = [2, 64, 16], strides = [1, 1, 1]} : vector<2x256x16xf32> to vector<2x64x16xf32>
    %15 = arith.maximumf %13, %14 : vector<2x64x16xf32>
    %16 = vector.extract_strided_slice %12 {offsets = [0, 128, 0], sizes = [2, 64, 16], strides = [1, 1, 1]} : vector<2x256x16xf32> to vector<2x64x16xf32>
    %17 = arith.maximumf %15, %16 : vector<2x64x16xf32>
    %18 = vector.extract_strided_slice %12 {offsets = [0, 192, 0], sizes = [2, 64, 16], strides = [1, 1, 1]} : vector<2x256x16xf32> to vector<2x64x16xf32>
    %19 = arith.maximumf %17, %18 : vector<2x64x16xf32>
    %20 = arith.truncf %19 : vector<2x64x16xf32> to vector<2x64x16xbf16>
    %c0_11 = arith.constant 0 : index
    %c0_12 = arith.constant 0 : index
    %c0_13 = arith.constant 0 : index
    %c0_14 = arith.constant 0 : index
    %c0_15 = arith.constant 0 : index
    %21 = vector.load %arg5[%c0_11, %c0_12, %c0_13, %c0_14, %c0_15] : memref<1x1x2x64x16xbf16, #tpu.memory_space<vmem>>, vector<1x1x2x64x16xbf16>
    %22 = vector.shape_cast %21 : vector<1x1x2x64x16xbf16> to vector<2x64x16xbf16>
    %23 = vector.shape_cast %20 : vector<2x64x16xbf16> to vector<1x1x2x64x16xbf16>
    tpu.vector_store %arg5[%c0_11, %c0_12, %c0_13, %c0_14, %c0_15], %23 {strides = array<i32>} : memref<1x1x2x64x16xbf16, #tpu.memory_space<vmem>>, vector<1x1x2x64x16xbf16>,
    return
  }
  func.func @transform_0(%arg0: i32, %arg1: i32) -> (i32, i32, i32, i32, i32) {
    %c0_i32 = arith.constant 0 : i32
    %c0_i32_0 = arith.constant 0 : i32
    %c0_i32_1 = arith.constant 0 : i32
    %c0_i32_2 = arith.constant 0 : i32
    return %arg0, %arg1, %c0_i32, %c0_i32_0, %c0_i32_1 : i32, i32, i32, i32, i32
  }
  func.func @transform_1(%arg0: i32, %arg1: i32) -> (i32, i32, i32) {
    %c0_i32 = arith.constant 0 : i32
    %c0_i32_0 = arith.constant 0 : i32
    %c0_i32_1 = arith.constant 0 : i32
    return %arg0, %c0_i32, %c0_i32_0 : i32, i32, i32
  }
  func.func @transform_2(%arg0: i32, %arg1: i32) -> (i32, i32, i32) {
    %c0_i32 = arith.constant 0 : i32
    %c0_i32_0 = arith.constant 0 : i32
    %c0_i32_1 = arith.constant 0 : i32
    return %arg0, %c0_i32, %c0_i32_0 : i32, i32, i32
  }
  func.func @transform_3(%arg0: i32, %arg1: i32) -> (i32, i32, i32, i32, i32) {
    %c0_i32 = arith.constant 0 : i32
    %c0_i32_0 = arith.constant 0 : i32
    %c0_i32_1 = arith.constant 0 : i32
    %c0_i32_2 = arith.constant 0 : i32
    return %arg0, %arg1, %c0_i32, %c0_i32_0, %c0_i32_1 : i32, i32, i32, i32, i32
  }
}

</mosaic_0001>

<bundles_post_ra>
// kernel: tpu_custom_call.1
= control target key start
LH: loop header
LB: loop body
LE: loop exit
PB: predicated region body
PF: predicated region fallthrough
CT: control target
= control target key end

     0   :  { %s1512_s12 = smov 0   ;;  %s1514_s13 = smov 0   ;;  %s1843_s0 = inlined_call_operand.vmem [shape: bf16[2,1,2,256,27], index: 0, kind: input, shape index: {}]   ;;  %s1844_s1 = inlined_call_operand.vmem [shape: bf16[2,27,16], index: 1, kind: input, shape index: {}]   ;;  %s1845_s2 = inlined_call_operand.vmem [shape: f32[2,1,16], index: 2, kind: input, shape index: {}]   ;;  %s1846_s3 = inlined_call_operand.vmem [shape: bf16[2,1,2,64,16], index: 3, kind: output, shape index: {}]  }
   0x1   :  { %s1516_s14 = smov 0  }
   0x2 LB: > { %s25_s15 = sadd.s32 1, %s1485_s13  ;;  %p1191_p0 = scmp.ge.s32.totalorder %s1489_s14, 1  ;;  %s1489_s14 = sphi %s1516_s14, %s13_s14   ;;  %s1485_s13 = sphi %s1514_s13, %s1848_s13   ;;  %s1481_s12 = sphi %s1512_s12, %s1847_s12  }
   0x3   : > { %p27_p1 = scmp.ge.s32.totalorder %s25_s15, 2  ;;  %p175_p2 = scmp.lt.s32.totalorder %s1489_s14, 3 }
   0x5   : > { %s1850_s15 = smov (%p27_p1, %s25_s15), 0  ;;  %p176_p3 = pnand %p1191_p0, %p175_p2 }
   0x6   : > { %p215_p4 = scmp.lt.s32.totalorder (!%p176_p3), %s1481_s12, 1  ;;  %vm585_vm0 = vcmask (!%p176_p3), 1044480   ;;  %vm586_vm1 = vcmask (!%p176_p3), 1045504   ;;  %v1491_v0 = vmov (!%p176_p3), 65535   ;;  %vm488_vm2 = vcmask (!%p176_p3), 220160  }
   0x7   : > { %179 = sbr.rel (%p176_p3) target bundleno = 307 (0x133), region = 32  ;;  %v587_v1 = vsel (!%p176_p3), %vm585_vm0, 4294967295, %v1491_v0  ;;  %vm1057_vm3 = vcmask (!%p176_p3), 125952  }
   0x8   : > { %v588_v3 = vsel (!%p176_p3), %vm586_vm1, %v587_v1, 0 }
   0xe   : > { %s1852_s12 = smov (!%p215_p4, %s1481_s12), 1 }
   0xf   : > { %s1283_s16 = sshll.u32 %s1852_s12, 8  ;;  %s1284_s17 = sshll.u32 %s1852_s12, 4 }
  0x10   : > { %s228_s20 = scalar_lea.vmem %s1844_s1, %s1284_s17  ;;  %s1540_s23 = scalar_lea.vmem %s1843_s0, %s1283_s16 }
  0x11   : > { %v1433_v2 = vld [vmem:[%s228_s20] sm:$0xff]   ;;  %v1434_v4 = vld [vmem:[%s228_s20 + $0x8] sm:$0x3f]   ;;  %v1439_v10 = vld [vmem:[%s1540_s23 + $0x10] sm:$0xff]   ;;  %s231_s26 = scalar_lea.vmem %s1845_s2, %s1852_s12  ;;  %s1285_s27 = sshll.u32 %s1852_s12, 6 }
  0x12   : > { %1336 = vmatprep.subr.bf16.mxu0 %v1433_v2  ;;  %1404 = vmatprep.subr.bf16.mxu1 %v1433_v2  ;;  %v1435_v5 = vld [vmem:[%s1540_s23] sm:$0xff]   ;;  %v590_v6 = vand.u32 %v1434_v4, %v588_v3  ;;  %v1437_v8 = vld [vmem:[%s1540_s23 + $0x8] sm:$0xff]   ;;  %v1440_v11 = vld [vmem:[%s1540_s23 + $0x90] sm:$0xff]   ;;  %s1778_s30 = scalar_lea.vmem %s1846_s3, %s1285_s27 }
  0x13   : > { %1337 = vmatpush3.bf16.msra.mxu0 %v1433_v2  ;;  %1406 = vmatpush3.bf16.msra.mxu1 %v1433_v2  ;;  %v1436_v7 = vld [vmem:[%s1540_s23 + $0x80] sm:$0xff]   ;;  %v1438_v9 = vld [vmem:[%s1540_s23 + $0x88] sm:$0xff]   ;;  %v1441_v12 = vld [vmem:[%s1540_s23 + $0x18] sm:$0xff]  }
  0x14   : > { %1340 = vmatprep.mubr.msk.bf16.mxu0 %vm488_vm2, %v1435_v5  ;;  %1338 = vmatprep.subr.bf16.mxu0 %v590_v6  ;;  %v1442_v13 = vld [vmem:[%s1540_s23 + $0x98] sm:$0xff]   ;;  %v1443_v14 = vld [vmem:[%s1540_s23 + $0x20] sm:$0xff]   ;;  %v1445_v16 = vld [vmem:[%s1540_s23 + $0x28] sm:$0xff]  }
  0x15   : > { %1405 = vmatprep.subr.bf16.mxu1 %v590_v6  ;;  %1372 = vmatprep.mubr.msk.bf16.mxu1 %vm488_vm2, %v1436_v7  ;;  %v1444_v15 = vld [vmem:[%s1540_s23 + $0xa0] sm:$0xff]   ;;  %v1446_v17 = vld [vmem:[%s1540_s23 + $0xa8] sm:$0xff]   ;;  %v1447_v18 = vld [vmem:[%s1540_s23 + $0x30] sm:$0xff]  }
  0x16   : > { %v1448_v19 = vld [vmem:[%s1540_s23 + $0xb0] sm:$0xff]   ;;  %v1449_v20 = vld [vmem:[%s1540_s23 + $0x38] sm:$0xff]   ;;  %v1451_v22 = vld [vmem:[%s1540_s23 + $0x40] sm:$0xff]  }
  0x17   : > { %1339 = vmatpush3.bf16.msra.mxu0 %v590_v6  ;;  %1407 = vmatpush3.bf16.msra.mxu1 %v590_v6  ;;  %v1450_v21 = vld [vmem:[%s1540_s23 + $0xb8] sm:$0xff]   ;;  %v1452_v23 = vld [vmem:[%s1540_s23 + $0xc0] sm:$0xff]   ;;  %v1453_v24 = vld [vmem:[%s1540_s23 + $0x48] sm:$0xff]  }
  0x18   : > { %v1454_v25 = vld [vmem:[%s1540_s23 + $0xc8] sm:$0xff]   ;;  %v1455_v26 = vld [vmem:[%s1540_s23 + $0x50] sm:$0xff]   ;;  %v1457_v28 = vld [vmem:[%s1540_s23 + $0x58] sm:$0xff]  }
  0x19   : > { %v1456_v27 = vld [vmem:[%s1540_s23 + $0xd0] sm:$0xff]   ;;  %v1458_v29 = vld [vmem:[%s1540_s23 + $0xd8] sm:$0xff]   ;;  %v1459_v30 = vld [vmem:[%s1540_s23 + $0x60] sm:$0xff]  }
  0x1a   : > { %1341 = vmatmul.mubr.msk.bf16.vlgmr.msra.gmra.mrb[0].mxu0 %vm488_vm2, %v1437_v8  ;;  %1373 = vmatmul.mubr.msk.bf16.vlgmr.msra.gmra.mrb[0].mxu1 %vm488_vm2, %v1438_v9  ;;  %v1460_v31 = vld [vmem:[%s1540_s23 + $0xe0] sm:$0xff]   ;;  %v1461_v32 = vld [vmem:[%s1540_s23 + $0x68] sm:$0xff]   ;;  %v1463_v34 = vld [vmem:[%s1540_s23 + $0x70] sm:$0xff]  }
  0x1b   : > { %1344 = vmatprep.mubr.msk.bf16.mxu0 %vm488_vm2, %v1439_v10  ;;  %1376 = vmatprep.mubr.msk.bf16.mxu1 %vm488_vm2, %v1440_v11  ;;  %v1462_v33 = vld [vmem:[%s1540_s23 + $0xe8] sm:$0xff]   ;;  %v1464_v35 = vld [vmem:[%s1540_s23 + $0xf0] sm:$0xff]   ;;  %v1465_v36 = vld [vmem:[%s1540_s23 + $0x78] sm:$0xff]  }
  0x1c   : > { %v1466_v37 = vld [vmem:[%s1540_s23 + $0xf8] sm:$0xff]   ;;  %v1610_v38 = vld [vmem:[%s231_s26] ss:$0 sm:$0xff] }
  0x22   : > { %1345 = vmatmul.mubr.msk.bf16.gmra.mrb[4].mxu0 %vm488_vm2, %v1441_v12  ;;  %1377 = vmatmul.mubr.msk.bf16.gmra.mrb[4].mxu1 %vm488_vm2, %v1442_v13 }
  0x23   : > { %1348 = vmatprep.mubr.msk.bf16.mxu0 %vm488_vm2, %v1443_v14  ;;  %1380 = vmatprep.mubr.msk.bf16.mxu1 %vm488_vm2, %v1444_v15 }
  0x2a   : > { %1349 = vmatmul.mubr.msk.bf16.gmra.mrb[8].mxu0 %vm488_vm2, %v1445_v16  ;;  %1381 = vmatmul.mubr.msk.bf16.gmra.mrb[8].mxu1 %vm488_vm2, %v1446_v17 }
  0x2b   : > { %1352 = vmatprep.mubr.msk.bf16.mxu0 %vm488_vm2, %v1447_v18  ;;  %1384 = vmatprep.mubr.msk.bf16.mxu1 %vm488_vm2, %v1448_v19 }
  0x32   : > { %1353 = vmatmul.mubr.msk.bf16.gmra.mrb[12].mxu0 %vm488_vm2, %v1449_v20  ;;  %1385 = vmatmul.mubr.msk.bf16.gmra.mrb[12].mxu1 %vm488_vm2, %v1450_v21 }
  0x33   : > { %1356 = vmatprep.mubr.msk.bf16.mxu0 %vm488_vm2, %v1451_v22  ;;  %1388 = vmatprep.mubr.msk.bf16.mxu1 %vm488_vm2, %v1452_v23 }
  0x3a   : > { %1357 = vmatmul.mubr.msk.bf16.gmra.mrb[16].mxu0 %vm488_vm2, %v1453_v24  ;;  %1389 = vmatmul.mubr.msk.bf16.gmra.mrb[16].mxu1 %vm488_vm2, %v1454_v25 }
  0x3b   : > { %1360 = vmatprep.mubr.msk.bf16.mxu0 %vm488_vm2, %v1455_v26  ;;  %1392 = vmatprep.mubr.msk.bf16.mxu1 %vm488_vm2, %v1456_v27 }
  0x42   : > { %1361 = vmatmul.mubr.msk.bf16.gmra.mrb[20].mxu0 %vm488_vm2, %v1457_v28  ;;  %1393 = vmatmul.mubr.msk.bf16.gmra.mrb[20].mxu1 %vm488_vm2, %v1458_v29 }
  0x43   : > { %1364 = vmatprep.mubr.msk.bf16.mxu0 %vm488_vm2, %v1459_v30  ;;  %1396 = vmatprep.mubr.msk.bf16.mxu1 %vm488_vm2, %v1460_v31 }
  0x4a   : > { %1365 = vmatmul.mubr.msk.bf16.gmra.mrb[24].mxu0 %vm488_vm2, %v1461_v32  ;;  %1397 = vmatmul.mubr.msk.bf16.gmra.mrb[24].mxu1 %vm488_vm2, %v1462_v33 }
  0x4b   : > { %1368 = vmatprep.mubr.msk.bf16.mxu0 %vm488_vm2, %v1463_v34  ;;  %1400 = vmatprep.mubr.msk.bf16.mxu1 %vm488_vm2, %v1464_v35 }
  0x52   : > { %1369 = vmatmul.mubr.msk.bf16.gmra.mrb[28].mxu0 %vm488_vm2, %v1465_v36  ;;  %1401 = vmatmul.mubr.msk.bf16.gmra.mrb[28].mxu1 %vm488_vm2, %v1466_v37 }
  0xed   : > { %v1342_v39 = vpop.f32.mrb[0].mxu0  ;;  %v1374_v40 = vpop.f32.mrb[0].mxu1 }
  0xee   : > { %v635_v41 = vadd.f32 %v1342_v39, %v1610_v38  ;;  %v763_v42 = vadd.f32 %v1374_v40, %v1610_v38  ;;  %v626_v43 = vpop.f32.mrb[1].mxu0  ;;  %v754_v44 = vpop.f32.mrb[1].mxu1 }
  0xef   : > { %v627_v45 = vadd.f32 %v1610_v38, %v626_v43  ;;  %v755_v46 = vadd.f32 %v1610_v38, %v754_v44  ;;  %v1343_v47 = vpop.f32.mrb[2].mxu0  ;;  %v1375_v48 = vpop.f32.mrb[2].mxu1 }
  0xf0   : > { %v638_v49 = vadd.f32 %v1343_v47, %v1610_v38  ;;  %v766_v50 = vadd.f32 %v1375_v48, %v1610_v38  ;;  %v629_v51 = vpop.f32.mrb[3].mxu0  ;;  %v757_v52 = vpop.f32.mrb[3].mxu1  ;;  %v883_v7 = vmax.f32 %v635_v41, 0.0  ;;  %v915_v8 = vmax.f32 %v763_v42, 0.0 }
  0xf1   : > { %v630_v53 = vadd.f32 %v1610_v38, %v629_v51  ;;  %v758_v54 = vadd.f32 %v1610_v38, %v757_v52  ;;  %v881_v9 = vmax.f32 %v627_v45, 0.0  ;;  %v913_v10 = vmax.f32 %v755_v46, 0.0 }
  0xf2   : > { %v884_v13 = vmax.f32 %v638_v49, 0.0  ;;  %v916_v14 = vmax.f32 %v766_v50, 0.0 }
  0xf3   : > { %v882_v19 = vmax.f32 %v630_v53, 0.0  ;;  %v914_v20 = vmax.f32 %v758_v54, 0.0 }
  0xf5   : > { %v1346_v55 = vpop.f32.mrb[4].mxu0  ;;  %v1378_v56 = vpop.f32.mrb[4].mxu1 }
  0xf6   : > { %v1621_v57 = vadd.f32 %v1346_v55, %v1610_v38  ;;  %v1624_v58 = vadd.f32 %v1378_v56, %v1610_v38  ;;  %v642_v59 = vpop.f32.mrb[5].mxu0  ;;  %v770_v60 = vpop.f32.mrb[5].mxu1 }
  0xf7   : > { %v1627_v61 = vadd.f32 %v1610_v38, %v642_v59  ;;  %v1630_v62 = vadd.f32 %v1610_v38, %v770_v60  ;;  %v1347_v63 = vpop.f32.mrb[6].mxu0  ;;  %v1379_v0 = vpop.f32.mrb[6].mxu1 }
  0xf8   : > { %v1633_v1 = vadd.f32 %v1347_v63, %v1610_v38  ;;  %v1636_v2 = vadd.f32 %v1379_v0, %v1610_v38  ;;  %v645_v3 = vpop.f32.mrb[7].mxu0  ;;  %v773_v4 = vpop.f32.mrb[7].mxu1  ;;  %v887_v44 = vmax.f32 %v1621_v57, 0.0  ;;  %v919_v45 = vmax.f32 %v1624_v58, 0.0 }
  0xf9   : > { %v1639_v5 = vadd.f32 %v1610_v38, %v645_v3  ;;  %v1642_v6 = vadd.f32 %v1610_v38, %v773_v4  ;;  %v885_v48 = vmax.f32 %v1627_v61, 0.0  ;;  %v917_v49 = vmax.f32 %v1630_v62, 0.0 }
  0xfa   : > { %v888_v54 = vmax.f32 %v1633_v1, 0.0  ;;  %v920_v55 = vmax.f32 %v1636_v2, 0.0 }
  0xfb   : > { %v886_v60 = vmax.f32 %v1639_v5, 0.0  ;;  %v918_v61 = vmax.f32 %v1642_v6, 0.0 }
  0xfd   : > { %v1350_v11 = vpop.f32.mrb[8].mxu0  ;;  %v1382_v12 = vpop.f32.mrb[8].mxu1 }
  0xfe   : > { %v667_v15 = vadd.f32 %v1350_v11, %v1610_v38  ;;  %v795_v16 = vadd.f32 %v1382_v12, %v1610_v38  ;;  %v658_v17 = vpop.f32.mrb[9].mxu0  ;;  %v786_v18 = vpop.f32.mrb[9].mxu1 }
  0xff   : > { %v659_v21 = vadd.f32 %v1610_v38, %v658_v17  ;;  %v787_v22 = vadd.f32 %v1610_v38, %v786_v18  ;;  %v1351_v23 = vpop.f32.mrb[10].mxu0  ;;  %v1383_v24 = vpop.f32.mrb[10].mxu1 }
 0x100   : > { %v891_v25 = vmax.f32 %v667_v15, 0.0  ;;  %v923_v26 = vmax.f32 %v795_v16, 0.0  ;;  %v670_v27 = vadd.f32 %v1351_v23, %v1610_v38  ;;  %v798_v28 = vadd.f32 %v1383_v24, %v1610_v38  ;;  %v661_v29 = vpop.f32.mrb[11].mxu0  ;;  %v789_v30 = vpop.f32.mrb[11].mxu1 }
 0x101   : > { %v889_v31 = vmax.f32 %v659_v21, 0.0  ;;  %v921_v32 = vmax.f32 %v787_v22, 0.0  ;;  %v662_v33 = vadd.f32 %v1610_v38, %v661_v29  ;;  %v790_v34 = vadd.f32 %v1610_v38, %v789_v30 }
 0x102   : > { %v1652_v35 = vmax.f32 %v883_v7, %v891_v25  ;;  %v1654_v36 = vmax.f32 %v915_v8, %v923_v26  ;;  %v892_v37 = vmax.f32 %v670_v27, 0.0  ;;  %v924_v39 = vmax.f32 %v798_v28, 0.0 }
 0x103   : > { %v1656_v40 = vmax.f32 %v881_v9, %v889_v31  ;;  %v1658_v41 = vmax.f32 %v913_v10, %v921_v32  ;;  %v890_v42 = vmax.f32 %v662_v33, 0.0  ;;  %v922_v43 = vmax.f32 %v790_v34, 0.0 }
 0x104   : > { %v1662_v46 = vmax.f32 %v884_v13, %v892_v37  ;;  %v1664_v47 = vmax.f32 %v916_v14, %v924_v39 }
 0x105   : > { %v1668_v50 = vmax.f32 %v882_v19, %v890_v42  ;;  %v1670_v51 = vmax.f32 %v914_v20, %v922_v43  ;;  %v1354_v52 = vpop.f32.mrb[12].mxu0  ;;  %v1386_v53 = vpop.f32.mrb[12].mxu1 }
 0x106   : > { %v683_v56 = vadd.f32 %v1354_v52, %v1610_v38  ;;  %v811_v57 = vadd.f32 %v1386_v53, %v1610_v38  ;;  %v674_v58 = vpop.f32.mrb[13].mxu0  ;;  %v802_v59 = vpop.f32.mrb[13].mxu1 }
 0x107   : > { %v675_v62 = vadd.f32 %v1610_v38, %v674_v58  ;;  %v803_v63 = vadd.f32 %v1610_v38, %v802_v59  ;;  %v1355_v0 = vpop.f32.mrb[14].mxu0  ;;  %v1387_v3 = vpop.f32.mrb[14].mxu1 }
 0x108   : > { %v895_v4 = vmax.f32 %v683_v56, 0.0  ;;  %v927_v1 = vmax.f32 %v811_v57, 0.0  ;;  %v686_v2 = vadd.f32 %v1355_v0, %v1610_v38  ;;  %v814_v7 = vadd.f32 %v1387_v3, %v1610_v38  ;;  %v677_v8 = vpop.f32.mrb[15].mxu0  ;;  %v805_v9 = vpop.f32.mrb[15].mxu1 }
 0x109   : > { %v893_v10 = vmax.f32 %v675_v62, 0.0  ;;  %v925_v11 = vmax.f32 %v803_v63, 0.0  ;;  %v678_v5 = vadd.f32 %v1610_v38, %v677_v8  ;;  %v806_v6 = vadd.f32 %v1610_v38, %v805_v9 }
 0x10a   : > { %v1684_v12 = vmax.f32 %v887_v44, %v895_v4  ;;  %v1686_v13 = vmax.f32 %v919_v45, %v927_v1  ;;  %v896_v14 = vmax.f32 %v686_v2, 0.0  ;;  %v928_v15 = vmax.f32 %v814_v7, 0.0 }
 0x10b   : > { %v1688_v16 = vmax.f32 %v885_v48, %v893_v10  ;;  %v1690_v17 = vmax.f32 %v917_v49, %v925_v11  ;;  %v894_v18 = vmax.f32 %v678_v5, 0.0  ;;  %v926_v19 = vmax.f32 %v806_v6, 0.0 }
 0x10c   : > { %v1692_v20 = vmax.f32 %v888_v54, %v896_v14  ;;  %v1694_v21 = vmax.f32 %v920_v55, %v928_v15 }
 0x10d   : > { %v1696_v22 = vmax.f32 %v886_v60, %v894_v18  ;;  %v1698_v23 = vmax.f32 %v918_v61, %v926_v19  ;;  %v1358_v24 = vpop.f32.mrb[16].mxu0  ;;  %v1390_v25 = vpop.f32.mrb[16].mxu1 }
 0x10e   : > { %v699_v26 = vadd.f32 %v1358_v24, %v1610_v38  ;;  %v827_v27 = vadd.f32 %v1390_v25, %v1610_v38  ;;  %v690_v28 = vpop.f32.mrb[17].mxu0  ;;  %v818_v29 = vpop.f32.mrb[17].mxu1 }
 0x10f   : > { %v691_v30 = vadd.f32 %v1610_v38, %v690_v28  ;;  %v819_v31 = vadd.f32 %v1610_v38, %v818_v29  ;;  %v1359_v32 = vpop.f32.mrb[18].mxu0  ;;  %v1391_v33 = vpop.f32.mrb[18].mxu1 }
 0x110   : > { %v899_v34 = vmax.f32 %v699_v26, 0.0  ;;  %v931_v37 = vmax.f32 %v827_v27, 0.0  ;;  %v702_v39 = vadd.f32 %v1359_v32, %v1610_v38  ;;  %v830_v42 = vadd.f32 %v1391_v33, %v1610_v38  ;;  %v693_v43 = vpop.f32.mrb[19].mxu0  ;;  %v821_v44 = vpop.f32.mrb[19].mxu1 }
 0x111   : > { %v897_v45 = vmax.f32 %v691_v30, 0.0  ;;  %v929_v48 = vmax.f32 %v819_v31, 0.0  ;;  %v694_v49 = vadd.f32 %v1610_v38, %v693_v43  ;;  %v822_v52 = vadd.f32 %v1610_v38, %v821_v44 }
 0x112   : > { %v1709_v53 = vmax.f32 %v1652_v35, %v899_v34  ;;  %v1712_v54 = vmax.f32 %v1654_v36, %v931_v37  ;;  %v900_v55 = vmax.f32 %v702_v39, 0.0  ;;  %v932_v56 = vmax.f32 %v830_v42, 0.0 }
 0x113   : > { %v1715_v57 = vmax.f32 %v1656_v40, %v897_v45  ;;  %v1718_v58 = vmax.f32 %v1658_v41, %v929_v48  ;;  %v898_v59 = vmax.f32 %v694_v49, 0.0  ;;  %v930_v60 = vmax.f32 %v822_v52, 0.0 }
 0x114   : > { %v1721_v61 = vmax.f32 %v1662_v46, %v900_v55  ;;  %v1724_v62 = vmax.f32 %v1664_v47, %v932_v56 }
 0x115   : > { %v1727_v35 = vmax.f32 %v1668_v50, %v898_v59  ;;  %v1730_v36 = vmax.f32 %v1670_v51, %v930_v60  ;;  %v1362_v63 = vpop.f32.mrb[20].mxu0  ;;  %v1394_v40 = vpop.f32.mrb[20].mxu1 }
 0x116   : > { %v715_v0 = vadd.f32 %v1362_v63, %v1610_v38  ;;  %v843_v41 = vadd.f32 %v1394_v40, %v1610_v38  ;;  %v706_v3 = vpop.f32.mrb[21].mxu0  ;;  %v834_v4 = vpop.f32.mrb[21].mxu1 }
 0x117   : > { %v707_v46 = vadd.f32 %v1610_v38, %v706_v3  ;;  %v835_v1 = vadd.f32 %v1610_v38, %v834_v4  ;;  %v1363_v47 = vpop.f32.mrb[22].mxu0  ;;  %v1395_v2 = vpop.f32.mrb[22].mxu1 }
 0x118   : > { %v903_v7 = vmax.f32 %v715_v0, 0.0  ;;  %v935_v50 = vmax.f32 %v843_v41, 0.0  ;;  %v718_v8 = vadd.f32 %v1363_v47, %v1610_v38  ;;  %v846_v51 = vadd.f32 %v1395_v2, %v1610_v38  ;;  %v709_v9 = vpop.f32.mrb[23].mxu0  ;;  %v837_v10 = vpop.f32.mrb[23].mxu1 }
 0x119   : > { %v901_v11 = vmax.f32 %v707_v46, 0.0  ;;  %v933_v5 = vmax.f32 %v835_v1, 0.0  ;;  %v710_v6 = vadd.f32 %v1610_v38, %v709_v9  ;;  %v838_v14 = vadd.f32 %v1610_v38, %v837_v10 }
 0x11a   : > { %v1741_v15 = vmax.f32 %v1684_v12, %v903_v7  ;;  %v1744_v18 = vmax.f32 %v1686_v13, %v935_v50  ;;  %v904_v19 = vmax.f32 %v718_v8, 0.0  ;;  %v936_v24 = vmax.f32 %v846_v51, 0.0 }
 0x11b   : > { %v1747_v25 = vmax.f32 %v1688_v16, %v901_v11  ;;  %v1750_v26 = vmax.f32 %v1690_v17, %v933_v5  ;;  %v902_v27 = vmax.f32 %v710_v6, 0.0  ;;  %v934_v28 = vmax.f32 %v838_v14, 0.0 }
 0x11c   : > { %v1753_v29 = vmax.f32 %v1692_v20, %v904_v19  ;;  %v1756_v12 = vmax.f32 %v1694_v21, %v936_v24 }
 0x11d   : > { %v1759_v13 = vmax.f32 %v1696_v22, %v902_v27  ;;  %v1762_v30 = vmax.f32 %v1698_v23, %v934_v28  ;;  %v1366_v16 = vpop.f32.mrb[24].mxu0  ;;  %v1398_v31 = vpop.f32.mrb[24].mxu1 }
 0x11e   : > { %v731_v17 = vadd.f32 %v1366_v16, %v1610_v38  ;;  %v859_v32 = vadd.f32 %v1398_v31, %v1610_v38  ;;  %v722_v33 = vpop.f32.mrb[25].mxu0  ;;  %v850_v34 = vpop.f32.mrb[25].mxu1 }
 0x11f   : > { %v723_v20 = vadd.f32 %v1610_v38, %v722_v33  ;;  %v851_v21 = vadd.f32 %v1610_v38, %v850_v34  ;;  %v1367_v37 = vpop.f32.mrb[26].mxu0  ;;  %v1399_v39 = vpop.f32.mrb[26].mxu1 }
 0x120   : > { %v907_v22 = vmax.f32 %v731_v17, 0.0  ;;  %v939_v42 = vmax.f32 %v859_v32, 0.0  ;;  %v734_v23 = vadd.f32 %v1367_v37, %v1610_v38  ;;  %v862_v43 = vadd.f32 %v1399_v39, %v1610_v38  ;;  %v725_v44 = vpop.f32.mrb[27].mxu0  ;;  %v853_v45 = vpop.f32.mrb[27].mxu1 }
 0x121   : > { %v905_v48 = vmax.f32 %v723_v20, 0.0  ;;  %v937_v49 = vmax.f32 %v851_v21, 0.0  ;;  %v726_v52 = vadd.f32 %v1610_v38, %v725_v44  ;;  %v854_v55 = vadd.f32 %v1610_v38, %v853_v45 }
 0x122   : > { %v979_v56 = vmax.f32 %v1709_v53, %v907_v22  ;;  %v987_v59 = vmax.f32 %v1712_v54, %v939_v42  ;;  %v908_v60 = vmax.f32 %v734_v23, 0.0  ;;  %v940_v63 = vmax.f32 %v862_v43, 0.0 }
 0x123   : > { %v977_v40 = vmax.f32 %v1715_v57, %v905_v48  ;;  %v985_v0 = vmax.f32 %v1718_v58, %v937_v49  ;;  %v906_v41 = vmax.f32 %v726_v52, 0.0  ;;  %v938_v3 = vmax.f32 %v854_v55, 0.0 }
 0x124   : > { %v1288_v4 = vpack.c.bf16 %v979_v56, %v979_v56  ;;  %v1296_v46 = vpack.c.bf16 %v987_v59, %v987_v59  ;;  %v980_v53 = vmax.f32 %v1721_v61, %v908_v60  ;;  %v988_v54 = vmax.f32 %v1724_v62, %v940_v63 }
 0x125   : > { %v1286_v1 = vpack.c.bf16 %v977_v40, %v977_v40  ;;  %v1294_v47 = vpack.c.bf16 %v985_v0, %v985_v0  ;;  %v978_v2 = vmax.f32 %v1727_v35, %v906_v41  ;;  %v986_v7 = vmax.f32 %v1730_v36, %v938_v3  ;;  %v1370_v50 = vpop.f32.mrb[28].mxu0  ;;  %v1402_v57 = vpop.f32.mrb[28].mxu1 }
 0x126   : > { %1060 = vst.msk [vmem:[%s1778_s30 + $0x8] sm:$0xf] %vm1057_vm3, %v1288_v4  ;;  %1068 = vst.msk [vmem:[%s1778_s30 + $0x28] sm:$0xf] %vm1057_vm3, %v1296_v46  ;;  %v1289_v58 = vpack.c.bf16 %v980_v53, %v980_v53  ;;  %v1297_v61 = vpack.c.bf16 %v988_v54, %v988_v54  ;;  %v747_v8 = vadd.f32 %v1370_v50, %v1610_v38  ;;  %v738_v51 = vpop.f32.mrb[29].mxu0  ;;  %v866_v9 = vpop.f32.mrb[29].mxu1 }
 0x127   : > { %v875_v62 = vadd.f32 %v1402_v57, %v1610_v38  ;;  %1058 = vst.msk [vmem:[%s1778_s30] sm:$0xf] %vm1057_vm3, %v1286_v1  ;;  %1066 = vst.msk [vmem:[%s1778_s30 + $0x20] sm:$0xf] %vm1057_vm3, %v1294_v47  ;;  %v1287_v35 = vpack.c.bf16 %v978_v2, %v978_v2  ;;  %v1295_v36 = vpack.c.bf16 %v986_v7, %v986_v7  ;;  %v1371_v5 = vpop.f32.mrb[30].mxu0  ;;  %v1403_v6 = vpop.f32.mrb[30].mxu1 }
 0x128   : > { %v739_v10 = vadd.f32 %v1610_v38, %v738_v51  ;;  %v867_v11 = vadd.f32 %v1610_v38, %v866_v9  ;;  %1061 = vst.msk [vmem:[%s1778_s30 + $0xc] sm:$0xf] %vm1057_vm3, %v1289_v58  ;;  %1069 = vst.msk [vmem:[%s1778_s30 + $0x2c] sm:$0xf] %vm1057_vm3, %v1297_v61  ;;  %v911_v14 = vmax.f32 %v747_v8, 0.0  ;;  %v750_v24 = vadd.f32 %v1371_v5, %v1610_v38  ;;  %v741_v28 = vpop.f32.mrb[31].mxu0 }
 0x129   : > { %v943_v19 = vmax.f32 %v875_v62, 0.0  ;;  %v878_v27 = vadd.f32 %v1403_v6, %v1610_v38  ;;  %v869_v16 = vpop.f32.mrb[31].mxu1  ;;  %1059 = vst.msk [vmem:[%s1778_s30 + $0x4] sm:$0xf] %vm1057_vm3, %v1287_v35  ;;  %1067 = vst.msk [vmem:[%s1778_s30 + $0x24] sm:$0xf] %vm1057_vm3, %v1295_v36  ;;  %v742_v32 = vadd.f32 %v1610_v38, %v741_v28 }
 0x12a   : > { %v909_v31 = vmax.f32 %v739_v10, 0.0  ;;  %v941_v17 = vmax.f32 %v867_v11, 0.0  ;;  %v870_v33 = vadd.f32 %v1610_v38, %v869_v16  ;;  %v983_v34 = vmax.f32 %v1741_v15, %v911_v14 }
 0x12b   : > { %v991_v20 = vmax.f32 %v1744_v18, %v943_v19  ;;  %v912_v21 = vmax.f32 %v750_v24, 0.0  ;;  %v944_v37 = vmax.f32 %v878_v27, 0.0  ;;  %v910_v42 = vmax.f32 %v742_v32, 0.0 }
 0x12c   : > { %v981_v39 = vmax.f32 %v1747_v25, %v909_v31  ;;  %v989_v22 = vmax.f32 %v1750_v26, %v941_v17  ;;  %v942_v23 = vmax.f32 %v870_v33, 0.0  ;;  %v1292_v43 = vpack.c.bf16 %v983_v34, %v983_v34 }
 0x12d   : > { %v1300_v44 = vpack.c.bf16 %v991_v20, %v991_v20  ;;  %v984_v38 = vmax.f32 %v1753_v29, %v912_v21  ;;  %v992_v15 = vmax.f32 %v1756_v12, %v944_v37  ;;  %v982_v25 = vmax.f32 %v1759_v13, %v910_v42 }
 0x12e   : > { %v1290_v18 = vpack.c.bf16 %v981_v39, %v981_v39  ;;  %v1298_v45 = vpack.c.bf16 %v989_v22, %v989_v22  ;;  %v990_v48 = vmax.f32 %v1762_v30, %v942_v23  ;;  %1064 = vst.msk [vmem:[%s1778_s30 + $0x18] sm:$0xf] %vm1057_vm3, %v1292_v43 }
 0x12f   : > { %1072 = vst.msk [vmem:[%s1778_s30 + $0x38] sm:$0xf] %vm1057_vm3, %v1300_v44  ;;  %v1293_v26 = vpack.c.bf16 %v984_v38, %v984_v38  ;;  %v1301_v49 = vpack.c.bf16 %v992_v15, %v992_v15  ;;  %v1291_v29 = vpack.c.bf16 %v982_v25, %v982_v25 }
 0x130   : > { %1062 = vst.msk [vmem:[%s1778_s30 + $0x10] sm:$0xf] %vm1057_vm3, %v1290_v18  ;;  %1070 = vst.msk [vmem:[%s1778_s30 + $0x30] sm:$0xf] %vm1057_vm3, %v1298_v45  ;;  %v1299_v52 = vpack.c.bf16 %v990_v48, %v990_v48 }
 0x131   : > { %1065 = vst.msk [vmem:[%s1778_s30 + $0x1c] sm:$0xf] %vm1057_vm3, %v1293_v26  ;;  %1073 = vst.msk [vmem:[%s1778_s30 + $0x3c] sm:$0xf] %vm1057_vm3, %v1301_v49 }
 0x132   : > { %1063 = vst.msk [vmem:[%s1778_s30 + $0x14] sm:$0xf] %vm1057_vm3, %v1291_v29  ;;  %1071 = vst.msk [vmem:[%s1778_s30 + $0x34] sm:$0xf] %vm1057_vm3, %v1299_v52 }
 0x133 PF: > { %s13_s14 = sadd.s32 1, %s1489_s14   ;;  %s1847_s12 = smov %s1485_s13 }
 0x134   : > { %p10_p5 = scmp.ge.s32.totalorder %s13_s14, 4   ;;  %s1848_s13 = smov %s1850_s15 }
 0x136   :  { %12 = sbr.rel (!%p10_p5) target bundleno = 2 (0x2), region = 68 }

</bundles_post_ra>
